<compile_context>
chip_gen: v7x
topology: tpu7x:2x2x1
jax: 0.10.0
libtpu: 0.0.40
codegen_flags: <defaults>
</compile_context>

<pallas_src>
import math

import jax
import jax.numpy as jnp
from jax.experimental import pallas as pl
from jax.experimental.pallas import tpu as pltpu


# ---------------------------------------------------------------------------
# Hardware-derived knobs
# ---------------------------------------------------------------------------
def _vmem_capacity_bytes():
    try:
        return int(pltpu.get_tpu_info().vmem_capacity_bytes)
    except Exception:
        return None


def _vmem_limit_bytes():
    cap = _vmem_capacity_bytes()
    if cap is None:
        return None                     # leave compiler default
    return int(cap * 3 // 4)            # ~96 MiB on 128 MiB parts, ~48 MiB on v7x


def _pick_tile(dim, targets):
    for t in targets:
        if dim % t == 0:
            return t
    return dim                          # full-extent block (allowed by Pallas)


# ---------------------------------------------------------------------------
# Generic tiled matmul (used for the QKV projection and the output projection)
# ---------------------------------------------------------------------------
def _matmul_kernel(a_ref, b_ref, o_ref, acc_ref):
    @pl.when(pl.program_id(2) == 0)
    def _():
        acc_ref[...] = jnp.zeros(acc_ref.shape, acc_ref.dtype)

    acc_ref[...] += jnp.dot(a_ref[...], b_ref[...],
                            preferred_element_type=jnp.float32)

    @pl.when(pl.program_id(2) == pl.num_programs(2) - 1)
    def _():
        o_ref[...] = acc_ref[...].astype(o_ref.dtype)


def _matmul(a, b):
    M, K = a.shape
    K2, N = b.shape
    assert K == K2
    tm = _pick_tile(M, (256, 128))
    tn = _pick_tile(N, (256, 128))
    tk = _pick_tile(K, (512, 256, 128))
    grid = (M // tm, N // tn, K // tk)

    itemsize = jnp.dtype(a.dtype).itemsize
    cost = pl.CostEstimate(
        flops=int(2 * M * N * K),
        transcendentals=0,
        bytes_accessed=int(itemsize * (M * K * (N // tn) + K * N * (M // tm) + M * N)),
    )

    return pl.pallas_call(
        _matmul_kernel,
        out_shape=jax.ShapeDtypeStruct((M, N), a.dtype),
        grid_spec=pltpu.PrefetchScalarGridSpec(
            num_scalar_prefetch=0,
            grid=grid,
            in_specs=[
                pl.BlockSpec((tm, tk), lambda i, j, k: (i, k)),
                pl.BlockSpec((tk, tn), lambda i, j, k: (k, j)),
            ],
            out_specs=pl.BlockSpec((tm, tn), lambda i, j, k: (i, j)),
            scratch_shapes=[pltpu.VMEM((tm, tn), jnp.float32)],
        ),
        compiler_params=pltpu.CompilerParams(
            dimension_semantics=("parallel", "parallel", "arbitrary"),
            vmem_limit_bytes=_vmem_limit_bytes(),
        ),
        cost_estimate=cost,
    )(a, b)


# ---------------------------------------------------------------------------
# Flash attention (head-batched, online softmax, deferred normalization)
# ---------------------------------------------------------------------------
def _flash_attn_kernel(q_ref, k_ref, v_ref, o_ref, m_sc, l_sc, acc_sc):
    # q_ref: (1, tq, dh)   (Q already scaled by 1/sqrt(dh) via the weights)
    # k_ref, v_ref: (1, tk, dh)
    # o_ref: (1, tq, dh)
    # scratch: m (tq,1) f32, l (tq,1) f32, acc (tq,dh) f32
    ki = pl.program_id(2)

    @pl.when(ki == 0)
    def _():
        m_sc[...] = jnp.full(m_sc.shape, -jnp.inf, dtype=m_sc.dtype)
        l_sc[...] = jnp.zeros(l_sc.shape, l_sc.dtype)
        acc_sc[...] = jnp.zeros(acc_sc.shape, acc_sc.dtype)

    q = q_ref[0]                                                   # (tq, dh)
    k = k_ref[0]                                                   # (tk, dh)
    v = v_ref[0]                                                   # (tk, dh)

    # Scores for this (q-tile, k-tile): contraction over dh, f32 accumulation.
    s = jax.lax.dot_general(q, k, (((1,), (1,)), ((), ())),
                            preferred_element_type=jnp.float32)    # (tq, tk)

    m_prev = m_sc[...]
    m_new = jnp.maximum(m_prev, jnp.max(s, axis=-1, keepdims=True))
    alpha = jnp.exp(m_prev - m_new)
    p = jnp.exp(s - m_new)                                         # unnormalized

    l_sc[...] = alpha * l_sc[...] + jnp.sum(p, axis=-1, keepdims=True)
    acc_sc[...] = alpha * acc_sc[...] + jnp.dot(
        p.astype(v.dtype), v, preferred_element_type=jnp.float32)
    m_sc[...] = m_new

    @pl.when(ki == pl.num_programs(2) - 1)
    def _():
        # Deferred normalization: one (tq, dh) scale, EUP approx reciprocal.
        o_ref[0] = (acc_sc[...] *
                    pl.reciprocal(l_sc[...], approx=True)).astype(o_ref.dtype)


def _flash_attention(q, k, v):
    """q, k, v: (B*H, S, dh) -> (B*H, S, dh)."""
    BH, S, dh = q.shape
    cap = _vmem_capacity_bytes()

    # Query tile: 128 by default; 256 on 128 MiB parts when S allows.
    if S >= 128:
        if cap is not None and cap >= 100 * (1 << 20) and S % 256 == 0:
            tq = 256
        else:
            tq = 128
    else:
        tq = S
    s_pad = ((S + tq - 1) // tq) * tq
    if s_pad != S:
        # Padding the QUERY axis is semantically safe (extra rows sliced off).
        q = jnp.pad(q, ((0, 0), (0, s_pad - S), (0, 0)))

    # Key axis must stay exact (no padded keys without masking).
    tk = 128 if S % 128 == 0 else S
    # TODO(synk): add a key-validity mask to allow 128-wide key tiles when S
    # is not a multiple of 128 (currently falls back to tk=S for ragged S).

    n_q = s_pad // tq
    n_k = S // tk

    itemsize = jnp.dtype(q.dtype).itemsize
    cost = pl.CostEstimate(
        flops=int(4 * BH * s_pad * S * dh),
        transcendentals=int(BH * s_pad * S),
        bytes_accessed=int(itemsize * (2 * BH * s_pad * dh          # q in, o out
                                       + 2 * BH * n_q * S * dh)),   # k, v per q tile
    )

    out = pl.pallas_call(
        _flash_attn_kernel,
        out_shape=jax.ShapeDtypeStruct((BH, s_pad, dh), q.dtype),
        grid_spec=pltpu.PrefetchScalarGridSpec(
            num_scalar_prefetch=0,
            grid=(BH, n_q, n_k),
            in_specs=[
                pl.BlockSpec((1, tq, dh), lambda bh, qi, ki: (bh, qi, 0)),
                pl.BlockSpec((1, tk, dh), lambda bh, qi, ki: (bh, ki, 0)),
                pl.BlockSpec((1, tk, dh), lambda bh, qi, ki: (bh, ki, 0)),
            ],
            out_specs=pl.BlockSpec((1, tq, dh), lambda bh, qi, ki: (bh, qi, 0)),
            scratch_shapes=[
                pltpu.VMEM((tq, 1), jnp.float32),    # running max
                pltpu.VMEM((tq, 1), jnp.float32),    # running sum
                pltpu.VMEM((tq, dh), jnp.float32),   # unnormalized context acc
            ],
        ),
        compiler_params=pltpu.CompilerParams(
            dimension_semantics=("parallel", "parallel", "arbitrary"),
            vmem_limit_bytes=_vmem_limit_bytes(),
        ),
        cost_estimate=cost,
    )(q, k, v)

    return out[:, :S, :]


# ---------------------------------------------------------------------------
# Full CustomMHA forward
# ---------------------------------------------------------------------------
def custom_mha(x, w_qkv, w_o, n_heads):
    """Pallas implementation of CustomMHA.forward.

    x: (B, S, D) or (S, D); w_qkv: (3D, D); w_o: (D, D).
    """
    added_batch = False
    if x.ndim == 2:
        added_batch = True
        x = x[None, :, :]
    B, S, D = x.shape
    assert D % n_heads == 0
    dh = D // n_heads
    dtype = x.dtype

    # Static-weight layout plumbing (zero runtime cost):
    #   * transpose so the kernels never transpose weights on-chip
    #   * fold 1/sqrt(dh) into the Q rows of W_qkv
    inv_sqrt_dh = 1.0 / math.sqrt(float(dh))
    w_qkv = jnp.asarray(w_qkv, dtype)
    w_o = jnp.asarray(w_o, dtype)
    row_scale = jnp.concatenate(
        [jnp.full((D,), inv_sqrt_dh, dtype), jnp.ones((2 * D,), dtype)])
    w_qkv_t = (w_qkv * row_scale[:, None]).T       # (D, 3D); Q columns pre-scaled
    w_o_t = w_o.T                                  # (D, D)

    # --- QKV projection (tiled matmul pallas_call) -------------------------
    x2 = x.reshape(B * S, D)
    qkv = _matmul(x2, w_qkv_t)                     # (B*S, 3D)

    # HBM-level head split (XLA layout ops outside any kernel).
    qkv = qkv.reshape(B, S, 3, n_heads, dh).transpose(2, 0, 3, 1, 4)
    q = qkv[0].reshape(B * n_heads, S, dh)
    k = qkv[1].reshape(B * n_heads, S, dh)
    v = qkv[2].reshape(B * n_heads, S, dh)

    # --- Attention (flash kernel) -------------------------------------------
    ctx = _flash_attention(q, k, v)                # (B*H, S, dh)

    # HBM-level head merge.
    ctx = ctx.reshape(B, n_heads, S, dh).transpose(0, 2, 1, 3).reshape(B * S, D)

    # --- Output projection (tiled matmul pallas_call) -----------------------
    out = _matmul(ctx, w_o_t).reshape(B, S, D)

    if added_batch:
        out = out[0]
    return out


# ---------------------------------------------------------------------------
# Pure-JAX reference (mirrors the PyTorch forward exactly)
# ---------------------------------------------------------------------------
def _reference_mha(x, w_qkv, w_o, n_heads):
    added_batch = False
    if x.ndim == 2:
        added_batch = True
        x = x[None, :, :]
    B, S, D = x.shape
    dh = D // n_heads
    qkv = x @ w_qkv.T
    q, k, v = jnp.split(qkv, 3, axis=-1)

    def heads(t):
        return t.reshape(B, S, n_heads, dh).transpose(0, 2, 1, 3).reshape(
            B * n_heads, S, dh)

    qh, kh, vh = heads(q), heads(k), heads(v)
    scores = jnp.matmul(qh, jnp.swapaxes(kh, 1, 2)) / math.sqrt(float(dh))
    attn = jax.nn.softmax(scores, axis=-1)
    o = jnp.matmul(attn, vh)
    o = o.reshape(B, n_heads, S, dh).transpose(0, 2, 1, 3).reshape(B, S, D)
    o = o @ w_o.T
    if added_batch:
        o = o[0]
    return o


if __name__ == "__main__":
    # Small shapes consistent with the module: batch=2, seq=8, d_model=32, heads=4
    B, S, D, H = 2, 8, 32, 4

    key = jax.random.PRNGKey(0)
    k_x, k_qkv, k_o = jax.random.split(key, 3)

    x = jax.random.normal(k_x, (B, S, D), dtype=jnp.float32)
    # Deterministic parameter init matching __init__: 0.01 * randn
    w_qkv = 0.01 * jax.random.normal(k_qkv, (3 * D, D), dtype=jnp.float32)
    w_o = 0.01 * jax.random.normal(k_o, (D, D), dtype=jnp.float32)

    # Batched path.
    out = jax.block_until_ready(custom_mha(x, w_qkv, w_o, H))
    ref = _reference_mha(x, w_qkv, w_o, H)
    assert out.shape == (B, S, D)
    # Tight tolerance: only the EUP approximate reciprocal (~2e-4 relative on
    # the softmax denominator) and f32 rounding separate kernel from reference.
    assert jnp.allclose(out, ref, atol=1e-5, rtol=1e-3), "mismatch vs reference (3D)"

    # Unbatched (2-D input) path of the original module.
    out2 = jax.block_until_ready(custom_mha(x[0], w_qkv, w_o, H))
    ref2 = _reference_mha(x[0], w_qkv, w_o, H)
    assert out2.shape == (S, D)
    assert jnp.allclose(out2, ref2, atol=1e-5, rtol=1e-3), "mismatch vs reference (2D)"

    print("KERNEL_OK")
</pallas_src>

<mosaic_0001>
module attributes {stable_mosaic.version = 11 : i64} {
  func.func @_matmul_kernel(%arg0: i32, %arg1: i32, %arg2: i32, %arg3: memref<16x32xf32, #tpu.memory_space<vmem>>, %arg4: memref<32x96xf32, #tpu.memory_space<vmem>>, %arg5: memref<16x96xf32, #tpu.memory_space<vmem>>, %arg6: memref<16x96xf32, #tpu.memory_space<vmem>>) attributes {dimension_semantics = [#tpu.dimension_semantics<parallel>, #tpu.dimension_semantics<parallel>, #tpu.dimension_semantics<arbitrary>], iteration_bounds = array<i64: 1, 1, 1>, scalar_prefetch = 0 : i64, scratch_operands = 1 : i64, tpu.core_type = #tpu.core_type<tc>, window_params = [{transform_indices = @transform_0, window_bounds = array<i64: 16, 32>}, {transform_indices = @transform_1, window_bounds = array<i64: 32, 96>}, {transform_indices = @transform_2, window_bounds = array<i64: 16, 96>}]} {
    %c0_i32 = arith.constant 0 : i32
    %0 = arith.cmpi eq, %arg2, %c0_i32 : i32
    %1 = arith.extui %0 : i1 to i32
    %c0_i32_0 = arith.constant 0 : i32
    %2 = arith.cmpi ne, %1, %c0_i32_0 : i32
    scf.if %2 {
      %cst_10 = arith.constant 0.000000e+00 : f32
      %12 = vector.broadcast %cst_10 : f32 to vector<16x96xf32>
      %c0_11 = arith.constant 0 : index
      %c0_12 = arith.constant 0 : index
      %13 = vector.load %arg6[%c0_11, %c0_12] : memref<16x96xf32, #tpu.memory_space<vmem>>, vector<16x96xf32>
      tpu.vector_store %arg6[%c0_11, %c0_12], %12 {strides = array<i32>} : memref<16x96xf32, #tpu.memory_space<vmem>>, vector<16x96xf32>,
    } else {
    }
    %c0 = arith.constant 0 : index
    %c0_1 = arith.constant 0 : index
    %3 = vector.load %arg6[%c0, %c0_1] : memref<16x96xf32, #tpu.memory_space<vmem>>, vector<16x96xf32>
    %c0_2 = arith.constant 0 : index
    %c0_3 = arith.constant 0 : index
    %4 = vector.load %arg3[%c0_2, %c0_3] : memref<16x32xf32, #tpu.memory_space<vmem>>, vector<16x32xf32>
    %c0_4 = arith.constant 0 : index
    %c0_5 = arith.constant 0 : index
    %5 = vector.load %arg4[%c0_4, %c0_5] : memref<32x96xf32, #tpu.memory_space<vmem>>, vector<32x96xf32>
    %cst = arith.constant dense<0.000000e+00> : vector<16x96xf32>
    %6 = tpu.matmul %4, %5, %cst {dimension_numbers = #tpu.dot_dimension_numbers<[1], [0], [0], [1], [0, 0, 1, 1], [], []>} : vector<16x32xf32>, vector<32x96xf32>, vector<16x96xf32> -> vector<16x96xf32>
    %7 = arith.addf %3, %6 : vector<16x96xf32>
    %c0_6 = arith.constant 0 : index
    %c0_7 = arith.constant 0 : index
    %8 = vector.load %arg6[%c0_6, %c0_7] : memref<16x96xf32, #tpu.memory_space<vmem>>, vector<16x96xf32>
    tpu.vector_store %arg6[%c0_6, %c0_7], %7 {strides = array<i32>} : memref<16x96xf32, #tpu.memory_space<vmem>>, vector<16x96xf32>,
    %c0_i32_8 = arith.constant 0 : i32
    %9 = arith.cmpi eq, %arg2, %c0_i32_8 : i32
    %10 = arith.extui %9 : i1 to i32
    %c0_i32_9 = arith.constant 0 : i32
    %11 = arith.cmpi ne, %10, %c0_i32_9 : i32
    scf.if %11 {
      %c0_10 = arith.constant 0 : index
      %c0_11 = arith.constant 0 : index
      %12 = vector.load %arg6[%c0_10, %c0_11] : memref<16x96xf32, #tpu.memory_space<vmem>>, vector<16x96xf32>
      %c0_12 = arith.constant 0 : index
      %c0_13 = arith.constant 0 : index
      %13 = vector.load %arg5[%c0_12, %c0_13] : memref<16x96xf32, #tpu.memory_space<vmem>>, vector<16x96xf32>
      tpu.vector_store %arg5[%c0_12, %c0_13], %12 {strides = array<i32>} : memref<16x96xf32, #tpu.memory_space<vmem>>, vector<16x96xf32>,
    } else {
    }
    return
  }
  func.func @transform_0(%arg0: i32, %arg1: i32, %arg2: i32) -> (i32, i32) {
    %c0_i32 = arith.constant 0 : i32
    return %arg0, %arg2 : i32, i32
  }
  func.func @transform_1(%arg0: i32, %arg1: i32, %arg2: i32) -> (i32, i32) {
    %c0_i32 = arith.constant 0 : i32
    return %arg2, %arg1 : i32, i32
  }
  func.func @transform_2(%arg0: i32, %arg1: i32, %arg2: i32) -> (i32, i32) {
    %c0_i32 = arith.constant 0 : i32
    return %arg0, %arg1 : i32, i32
  }
}

</mosaic_0001>

<bundles_post_ra>
// kernel: tpu_custom_call.1
= control target key start
LH: loop header
LB: loop body
LE: loop exit
PB: predicated region body
PF: predicated region fallthrough
CT: control target
= control target key end

     0   :  { %7 = vsyncpa [#allocation4], 0  ;;  %s344_s0 = inlined_call_operand.hbm [shape: f32[16,32], index: 0, kind: input, shape index: {}]   ;;  %s345_s1 = inlined_call_operand.hbm [shape: f32[32,96], index: 1, kind: input, shape index: {}]   ;;  %s346_s2 = inlined_call_operand.hbm [shape: f32[16,96], index: 2, kind: output, shape index: {}]  }
   0x1   :  { %8 = vsyncpa [#allocation7], 0 }
   0x2   :  { %9 = vsyncpa [#allocation5], 0  ;;  %s272_s9 = smov [#allocation3]   ;;  %s200_s13 = scalar_lea.hbm %s344_s0, 256 }
   0x3   :  { %s15_s10 = sshll.u32 %s272_s9, 4  ;;  %p201_p0 = scmp.ne.s32.totalorder %s344_s0, %s200_s13  ;;  %s16_s10 = int_to_ptr.vmem [resolvable:$true] %s15_s10 }
   0x4   :  { %p204_p1 = scmp.lt.u32.totalorder %s200_s13, %s344_s0 }
   0x6   :  { %p206_p2 = pnand %p204_p1, %p201_p0 }
   0x8   :  { %209 = shalt.err (!%p206_p2)
}
   0x9   :  { %s210_s18 = scalar_lea.vmem %s16_s10, 256  ;;  %p215_p4 = scmp.lt.s32.totalorder %s16_s10, %s16_s10 }
   0xa   :  { %p211_p3 = scmp.ne.s32.totalorder %s16_s10, %s210_s18  ;;  %p216_p5 = scmp.lt.s32.totalorder %s210_s18, %s210_s18 }
   0xc   :  { %p217_p6 = por %p216_p5, %p215_p4 }
   0xe   :  { %p218_p7 = pnand %p217_p6, %p211_p3 }
  0x10   :  { %221 = shalt.err (!%p218_p7)
}
  0x11   :  { %s273_s19 = smov 128   ;;  %s274_s20 = smov 8  }
  0x12   :  { %21 = dma.hbm_to_vmem [thread:$0]  %s344_s0, 256, %s16_s10, [#allocation4], %s273_s19, %s273_s19, %s274_s20  }
  0x13   :  { %s275_s23 = smov [#allocation6]   ;;  %s222_s27 = scalar_lea.hbm %s345_s1, 512 }
  0x14   :  { %s27_s24 = sshll.u32 %s275_s23, 4  ;;  %p223_p8 = scmp.ne.s32.totalorder %s345_s1, %s222_s27  ;;  %s28_s24 = int_to_ptr.vmem [resolvable:$true] %s27_s24 }
  0x15   :  { %p226_p9 = scmp.lt.u32.totalorder %s222_s27, %s345_s1 }
  0x17   :  { %p228_p10 = pnand %p226_p9, %p223_p8 }
  0x19   :  { %231 = shalt.err (!%p228_p10)
}
  0x1a   :  { %s232_s4 = scalar_lea.vmem %s28_s24, 512  ;;  %p237_p12 = scmp.lt.s32.totalorder %s28_s24, %s28_s24 }
  0x1b   :  { %p233_p11 = scmp.ne.s32.totalorder %s28_s24, %s232_s4  ;;  %p238_p13 = scmp.lt.s32.totalorder %s232_s4, %s232_s4 }
  0x1d   :  { %p239_p0 = por %p238_p13, %p237_p12 }
  0x1f   :  { %p240_p1 = pnand %p239_p0, %p233_p11 }
  0x21   :  { %243 = shalt.err (!%p240_p1)
}
  0x22   :  { %33 = dma.hbm_to_vmem [thread:$0]  %s345_s1, 512, %s28_s24, [#allocation7], %s273_s19, %s273_s19, %s274_s20  }
  0x23   :  { %266 = dma.done.wait [#allocation4], 256  }
  0x24   :  { %267 = vsyncadd [#allocation4], 4294967040 }
  0x25   :  { %268 = dma.done.wait [#allocation7], 512  }
  0x26   :  { %269 = vsyncadd [#allocation7], 4294966784  ;;  %vm44_vm0 = vcmask 785408   ;;  %v276_v0 = vmov 0.0   ;;  %vm55_vm1 = vcmask 261120   ;;  %v51_v1 = vld [vmem:[#allocation6] sm:$0xff] }
  0x27   :  { %46 = vst.msk [vmem:[#allocation2 + $0x8] sm:$0xff] %vm44_vm0, %v276_v0  ;;  %45 = vst.msk [vmem:[#allocation2] sm:$0xff] %vm44_vm0, %v276_v0  ;;  %v52_v2 = vld [vmem:[#allocation6 + $0x8] sm:$0xff]  ;;  %v53_v3 = vld [vmem:[#allocation6 + $0x10] sm:$0xff]  ;;  %s277_s1 = smov [#allocation8]  }
  0x28   :  { %v186_v4 = vpack.c.bf16 %v52_v2, %v51_v1  ;;  %v54_v5 = vld [vmem:[#allocation6 + $0x18] sm:$0xff]  ;;  %v49_v6 = vld [vmem:[#allocation3] sm:$0xff]  ;;  %s154_s6 = sshll.u32 %s277_s1, 4  ;;  %s155_s6 = int_to_ptr.vmem [resolvable:$true] %s154_s6 }
  0x29   :  { %v190_v7 = vpack.c.bf16 %v54_v5, %v53_v3  ;;  %183 = vmatprep.mubr.msk.f32.mxu0 %vm55_vm1, %v49_v6  ;;  %v50_v8 = vld [vmem:[#allocation3 + $0x8] sm:$0xff]  ;;  %s244_s7 = scalar_lea.vmem %s155_s6, 256  ;;  %p249_p3 = scmp.lt.s32.totalorder %s155_s6, %s155_s6 }
  0x2a   :  { %187 = vmatprep.subr.bf16.mxu0 %v186_v4  ;;  %p245_p2 = scmp.ne.s32.totalorder %s155_s6, %s244_s7  ;;  %p250_p4 = scmp.lt.s32.totalorder %s244_s7, %s244_s7 }
  0x2b   :  { %189 = vmatpush3.bf16.msra.mxu0 %v186_v4 }
  0x2c   :  { %191 = vmatprep.subr.bf16.mxu0 %v190_v7  ;;  %p251_p5 = por %p250_p4, %p249_p3 }
  0x2e   :  { %v48_v9 = vld [vmem:[#allocation2 + $0x8] sm:$0xff]  ;;  %v47_v10 = vld [vmem:[#allocation2] sm:$0xff]  ;;  %p252_p6 = pnand %p251_p5, %p245_p2 }
  0x2f   :  { %193 = vmatpush3.bf16.msra.mxu0 %v190_v7 }
  0x32   :  { %184 = vmatmul.mubr.msk.f32.vlgmr.msra.gmra.mrb[0].mxu0 %vm55_vm1, %v50_v8 }
 0x105   :  { %v185_v11 = vpop.f32.mrb[0].mxu0 }
 0x106   :  { %v138_v12 = vadd.f32 %v185_v11, %v48_v9  ;;  %v128_v13 = vpop.f32.mrb[1].mxu0 }
 0x107   :  { %v137_v14 = vadd.f32 %v128_v13, %v47_v10 }
 0x108   :  { %141 = vst.msk [vmem:[#allocation2 + $0x8] sm:$0xff] %vm44_vm0, %v138_v12 }
 0x109   :  { %140 = vst.msk [vmem:[#allocation2] sm:$0xff] %vm44_vm0, %v137_v14 }
 0x10f   :  { %v146_v15 = vld [vmem:[#allocation2 + $0x8] sm:$0xff] }
 0x110   :  { %v145_v16 = vld [vmem:[#allocation2] sm:$0xff]  ;;  %148 = vst.msk [vmem:[#allocation8 + $0x8] sm:$0xff] %vm44_vm0, %v146_v15 }
 0x111   :  { %147 = vst.msk [vmem:[#allocation8] sm:$0xff] %vm44_vm0, %v145_v16 }
 0x112   :  { %255 = shalt.err (!%p252_p6)
}
 0x113   :  { %s256_s10 = scalar_lea.hbm %s346_s2, 256 }
 0x114   :  { %p257_p7 = scmp.ne.s32.totalorder %s346_s2, %s256_s10  ;;  %p260_p8 = scmp.lt.u32.totalorder %s256_s10, %s346_s2 }
 0x116   :  { %p262_p9 = pnand %p260_p8, %p257_p7 }
 0x118   :  { %265 = shalt.err (!%p262_p9)
}
 0x119   :  { %160 = dma.vmem_to_hbm [thread:$0]  %s155_s6, 256, %s346_s2, [#allocation5], %s273_s19, %s273_s19, %s274_s20  }
 0x11a   :  { %270 = dma.done.wait [#allocation5], 256  }
 0x11b   :  { %271 = vsyncadd [#allocation5], 4294967040 }
 0x11c   :  { %164 = vsyncpa [#allocation4], 1 }
 0x11d   :  { %165 = vsyncpa [#allocation7], 1 }
 0x11e   :  { %166 = vsyncpa [#allocation5], 1 }

</bundles_post_ra>
